<compile_context>
chip_gen: v5e
topology: v5e:2x2
jax: 0.10.0
libtpu: 0.0.40
codegen_flags: <defaults>
</compile_context>

<pallas_src>
import functools
import numpy as np
import jax
import jax.numpy as jnp
from jax import lax
from jax.experimental import pallas as pl
from jax.experimental.pallas import tpu as pltpu

# ------------------------- fixed delta kernels (reference) -------------------
_D1 = np.array(
    [[[-1, 0, 0], [0, 1, 0], [0, 0, 0]],
     [[0, -1, 0], [0, 1, 0], [0, 0, 0]],
     [[0, 0, -1], [0, 1, 0], [0, 0, 0]],
     [[0, 0, 0], [0, 1, -1], [0, 0, 0]]], dtype=np.float32)
_D2 = _D1[:, ::-1, ::-1].copy()
DELTA_KERNELS = np.concatenate([_D1, _D2], axis=0)          # (8, 3, 3)

# delta_k(y)[i,j] = y[i,j] - y[i+dy, j+dx]   (dilation-3 depthwise, zero pad)
SHIFTS = [(-3, -3), (-3, 0), (-3, 3), (0, 3), (3, 3), (3, 0), (3, -3), (0, -3)]

# taps of the 3x3 / stride-2 / pad-1 conv after phase decomposition.
# phases: 0:A=mas[2i,2j] 1:B=mas[2i+1,2j] 2:C=mas[2i,2j+1] 3:D=mas[2i+1,2j+1].
# tap t = 3r+s reads phase p at (row, col) offset (di, dj); dj = -1 needs the
# "j >= 1" column-validity mask.
TAPS = ((3, -1, -1, True), (1, -1, 0, False), (3, -1, 0, False),
        (2, 0, -1, True), (0, 0, 0, False), (2, 0, 0, False),
        (3, 0, -1, True), (1, 0, 0, False), (3, 0, 0, False))


def _round_up(x, m):
    return ((x + m - 1) // m) * m


@functools.lru_cache(maxsize=None)
def _roll_is_numpy_convention() -> bool:
    """Pin down pltpu.roll's rotation direction with one tiny cached probe so
    the main kernel stays correct across Mosaic versions."""
    def probe(x_ref, o_ref):
        o_ref[...] = pltpu.roll(x_ref[...], 1, 1)
    x = jnp.broadcast_to(jnp.arange(128, dtype=jnp.float32), (8, 128))
    out = pl.pallas_call(
        probe, out_shape=jax.ShapeDtypeStruct((8, 128), jnp.float32))(x)
    return bool(out[0, 0] == 127.0)       # numpy convention: out[i] = x[i - shift]


def _vmem_limit_bytes():
    # Size the scoped-VMEM request per generation (<= ~75% of physical, capped)
    # instead of hard-coding 64 MiB (which is all of v7x's per-core VMEM).
    try:
        cap = int(pltpu.get_tpu_info().vmem_capacity_bytes)
        return min((cap * 3) // 4, 100 * 1024 * 1024)
    except Exception:
        return None                        # fall back to the compiler default


# ------------------------------ fused Pallas kernel ---------------------------
def _stconv_fused_kernel(mask_ref, ph_ref, cen_ref, wtap_ref, binp_ref,
                         wg_ref, woutp_ref, bout_ref, o_ref,
                         *, c, out_ch, W, L, roll_np):
    f32 = jnp.float32
    m_valid = mask_ref[0:1, :]            # f <  H*W       (1, L)
    m_j1 = mask_ref[1:2, :]               # j >= 1
    m_jm3 = mask_ref[2:3, :]              # j >= 3
    m_jp3 = mask_ref[3:4, :]              # j <= W - 4

    def shifted(arr, off):
        # result[:, f] = arr[:, f + off] (circular); callers guarantee every
        # wrapped / beyond-H*W position read is zero or gets masked.
        s = (-off) % L if roll_np else off % L
        return pltpu.roll(arr, s, 1) if s else arr

    # ----- inp_layer: 3x3 / stride-2 conv via phase decomposition + SiLU -----
    phases = (ph_ref[0, 0], ph_ref[0, 1], ph_ref[0, 2], ph_ref[0, 3])  # (c, L)
    x = jnp.zeros((c, L), f32)
    for t, (p, di, dj, need_mask) in enumerate(TAPS):
        tap = shifted(phases[p], di * W + dj)
        if need_mask:
            tap = tap * m_j1
        for i in range(c):                # rank-1 VPU MAC: (c,1) x (1,L)
            col = t * c + i
            x = x + wtap_ref[:, col:col + 1] * tap[i:i + 1, :]
    x = x + binp_ref[...]                 # (c,1) bias broadcast over lanes
    y = x * (1.0 / (1.0 + jnp.exp(-x)))   # SiLU (exp / recip on the EUP)
    y = y * m_valid                       # zero tail beyond H*W (row padding)

    # ----- 8 dilation-3 deltas + grouped 1x1 convs (layer1/2/3), all VPU -----
    z = jnp.zeros((c, L), f32)
    s1e, s1o, s2e, s2o, s3e, s3o = z, z, z, z, z, z
    for k, (dy, dx) in enumerate(SHIFTS):
        sh = shifted(y, dy * W + dx)
        if dx == -3:
            sh = sh * m_jm3
        elif dx == 3:
            sh = sh * m_jp3
        d = y - sh                        # delta_k, (c, L)
        s1e = s1e + wg_ref[:, k:k + 1] * d
        s1o = s1o + wg_ref[:, 8 + k:9 + k] * d
        s2e = s2e + wg_ref[:, 16 + k:17 + k] * d
        s2o = s2o + wg_ref[:, 24 + k:25 + k] * d
        s3e = s3e + wg_ref[:, 32 + k:33 + k] * d
        s3o = s3o + wg_ref[:, 40 + k:41 + k] * d
    # TODO(synk): if spill shows up at large H*W, split into two passes
    # (s1/s2 then s3) to shrink the live accumulator set.

    # ----- out_conv: rank-1 VPU MACs over [square_e|square_o|d3_e|d3_o|cen] --
    sq_e = s1e * s2e
    sq_o = s1o * s2o
    cen = cen_ref[0]                      # (2c, L)
    out = jnp.zeros((out_ch, L), f32)
    for g in range(c):
        out = out + woutp_ref[:, g:g + 1] * sq_e[g:g + 1, :]
        out = out + woutp_ref[:, c + g:c + g + 1] * sq_o[g:g + 1, :]
        out = out + woutp_ref[:, 2 * c + g:2 * c + g + 1] * s3e[g:g + 1, :]
        out = out + woutp_ref[:, 3 * c + g:3 * c + g + 1] * s3o[g:g + 1, :]
    for m in range(2 * c):
        out = out + woutp_ref[:, 4 * c + m:4 * c + m + 1] * cen[m:m + 1, :]
    out = out + bout_ref[...]             # (out,1) bias
    o_ref[0, :, :] = out.astype(o_ref.dtype)   # lane-dense (out_ch, L) store


# ------------------------------ forward (glue + kernel) -----------------------
def stconv_forward(cen, mas, params):
    B, C, H, W = cen.shape
    c = max(C // 2, 1)
    assert C == 2 * c, "STConv assumes an even number of input channels"
    assert mas.shape == (B, c, 2 * H, 2 * W)
    HW = H * W
    # lane width: zero tail absorbs the circular wrap of every shifted read
    L = _round_up(HW + 3 * W + 3, 128)
    out_ch = params["wout"].shape[0]
    f32 = jnp.float32

    # ---- phase decomposition of mas (channels-first, minor dim = spatial) ----
    A = mas[:, :, 0::2, 0::2]
    Bp = mas[:, :, 1::2, 0::2]
    Cp = mas[:, :, 0::2, 1::2]
    Dp = mas[:, :, 1::2, 1::2]
    phases = jnp.stack([A, Bp, Cp, Dp], axis=1).reshape(B, 4, c, HW)
    phases = jnp.pad(phases.astype(f32), ((0, 0), (0, 0), (0, 0), (0, L - HW)))

    cen_rows = jnp.pad(cen.reshape(B, C, HW).astype(f32),
                       ((0, 0), (0, 0), (0, L - HW)))

    # ---- column / tail validity masks (constant across batch) ----------------
    f = jnp.arange(L, dtype=jnp.int32)
    j = f % W
    mask = jnp.stack([(f < HW), (j >= 1), (j >= 3), (j <= W - 4)],
                     axis=0).astype(f32)                        # (4, L)

    # ---- weight packing (channels-first, ready for rank-1 broadcast MACs) ----
    # 3x3 conv: column t*c + i  ->  w_inp[:, i, t//3, t%3]
    wtap = jnp.transpose(params["w_inp"], (2, 3, 1, 0)).reshape(9 * c, c).T  # (c,9c)
    binp = params["b_inp"].reshape(c, 1)
    # grouped 1x1: 6 blocks of 8 columns [w1_e|w1_o|w2_e|w2_o|w3_e|w3_o];
    # column k of a block is the length-c per-channel weight of delta_k.
    wg = jnp.concatenate([
        params["w1"][0::2, :], params["w1"][1::2, :],
        params["w2"][0::2, :], params["w2"][1::2, :],
        params["w3"][0::2, :], params["w3"][1::2, :]], axis=1)   # (c, 48)
    wout = params["wout"]                                        # (out, 6c)
    woutp = jnp.concatenate([
        wout[:, 0:2 * c:2], wout[:, 1:2 * c:2],                  # square e / o
        wout[:, 2 * c:4 * c:2], wout[:, 2 * c + 1:4 * c:2],      # d3     e / o
        wout[:, 4 * c:6 * c]], axis=1)                           # cen
    bout = params["bout"].reshape(out_ch, 1)

    kernel = functools.partial(
        _stconv_fused_kernel, c=c, out_ch=out_ch, W=W, L=L,
        roll_np=_roll_is_numpy_convention())

    out_lanes = pl.pallas_call(
        kernel,
        out_shape=jax.ShapeDtypeStruct((B, out_ch, L), cen.dtype),
        grid=(B,),
        in_specs=[
            pl.BlockSpec((4, L), lambda b: (0, 0)),
            pl.BlockSpec((1, 4, c, L), lambda b: (b, 0, 0, 0)),
            pl.BlockSpec((1, C, L), lambda b: (b, 0, 0)),
            pl.BlockSpec((c, 9 * c), lambda b: (0, 0)),
            pl.BlockSpec((c, 1), lambda b: (0, 0)),
            pl.BlockSpec((c, 48), lambda b: (0, 0)),
            pl.BlockSpec((out_ch, 6 * c), lambda b: (0, 0)),
            pl.BlockSpec((out_ch, 1), lambda b: (0, 0)),
        ],
        out_specs=pl.BlockSpec((1, out_ch, L), lambda b: (b, 0, 0)),
        compiler_params=pltpu.CompilerParams(
            dimension_semantics=("parallel",),
            vmem_limit_bytes=_vmem_limit_bytes()),
    )(mask, phases, cen_rows, wtap, binp, wg, woutp, bout)

    return out_lanes[:, :, :HW].reshape(B, out_ch, H, W)


# ------------------------------ parameter setup -------------------------------
def init_params(key, in_channels, out):
    c_half = max(in_channels // 2, 1)
    ks = jax.random.split(key, 7)
    p = {}
    p["w_inp"] = 0.1 * jax.random.normal(ks[0], (c_half, c_half, 3, 3), jnp.float32)
    p["b_inp"] = 0.1 * jax.random.normal(ks[1], (c_half,), jnp.float32)
    p["w1"] = 0.1 * jax.random.normal(ks[2], (2 * c_half, 8), jnp.float32)
    p["w2"] = 0.1 * jax.random.normal(ks[3], (2 * c_half, 8), jnp.float32)
    p["w3"] = 0.1 * jax.random.normal(ks[4], (2 * c_half, 8), jnp.float32)
    p["wout"] = 0.1 * jax.random.normal(ks[5], (out, 3 * in_channels), jnp.float32)
    p["bout"] = 0.1 * jax.random.normal(ks[6], (out,), jnp.float32)
    return p
# NOTE: out_layer / initialize_biases exist in __init__ but are unused in forward().


# ------------------------------ pure-JAX reference -----------------------------
def stconv_reference(cen, mas, params):
    B, C, H, W = cen.shape
    c_half = max(C // 2, 1)
    dn = ("NCHW", "OIHW", "NCHW")
    y = lax.conv_general_dilated(mas, params["w_inp"], (2, 2), ((1, 1), (1, 1)),
                                 dimension_numbers=dn)
    y = y + params["b_inp"][None, :, None, None]
    y = y * jax.nn.sigmoid(y)
    deltas = []
    for k in range(8):
        wk = jnp.tile(jnp.asarray(DELTA_KERNELS[k])[None, None], (c_half, 1, 1, 1))
        dk = lax.conv_general_dilated(y, wk, (1, 1), ((3, 3), (3, 3)),
                                      rhs_dilation=(3, 3),
                                      feature_group_count=c_half,
                                      dimension_numbers=dn)
        deltas.append(dk)
    deltas = jnp.stack(deltas, axis=2).reshape(B, 8 * c_half, H, W)

    def g1x1(x, Wg):
        return lax.conv_general_dilated(x, Wg[:, :, None, None], (1, 1),
                                        ((0, 0), (0, 0)),
                                        feature_group_count=c_half,
                                        dimension_numbers=dn)

    square = g1x1(deltas, params["w1"]) * g1x1(deltas, params["w2"])
    d3 = g1x1(deltas, params["w3"])
    feat = jnp.concatenate([square, d3, cen], axis=1)
    out = lax.conv_general_dilated(feat, params["wout"][:, :, None, None], (1, 1),
                                   ((0, 0), (0, 0)), dimension_numbers=dn)
    return out + params["bout"][None, :, None, None]


if __name__ == "__main__":
    def _run_case(key, B, C, H, W, OUT):
        k_cen, k_mas, k_par = jax.random.split(key, 3)
        cen = jax.random.normal(k_cen, (B, C, H, W), jnp.float32)
        mas = jax.random.normal(k_mas, (B, max(C // 2, 1), 2 * H, 2 * W),
                                jnp.float32)
        params = init_params(k_par, C, OUT)
        out = jax.block_until_ready(stconv_forward(cen, mas, params))
        ref = jax.block_until_ready(stconv_reference(cen, mas, params))
        assert out.shape == (B, OUT, H, W)
        if not np.allclose(np.asarray(out), np.asarray(ref), rtol=1e-4, atol=1e-4):
            err = float(np.max(np.abs(np.asarray(out) - np.asarray(ref))))
            raise AssertionError(
                f"mismatch vs reference (max abs err {err:e}) for "
                f"B={B} C={C} H={H} W={W} OUT={OUT}")

    root = jax.random.PRNGKey(0)
    k1, k2 = jax.random.split(root)
    _run_case(k1, B=2, C=4, H=16, W=16, OUT=4)     # primary (spec-like) case
    _run_case(k2, B=1, C=6, H=5, W=7, OUT=3)       # odd / non-square shapes
    print("KERNEL_OK")
</pallas_src>

<mosaic_0001>
module attributes {stable_mosaic.version = 11 : i64} {
  func.func @probe(%arg0: memref<8x128xf32, #tpu.memory_space<vmem>>, %arg1: memref<8x128xf32, #tpu.memory_space<vmem>>) attributes {dimension_semantics = [], scalar_prefetch = 0 : i64, scratch_operands = 0 : i64, tpu.core_type = #tpu.core_type<tc>} {
    %c0 = arith.constant 0 : index
    %c0_0 = arith.constant 0 : index
    %0 = vector.load %arg0[%c0, %c0_0] : memref<8x128xf32, #tpu.memory_space<vmem>>, vector<8x128xf32>
    %c1_i32 = arith.constant 1 : i32
    %1 = tpu.dynamic_rotate %0 by %c1_i32 dim 1 : vector<8x128xf32>, i32 -> vector<8x128xf32>
    %c0_1 = arith.constant 0 : index
    %c0_2 = arith.constant 0 : index
    %2 = vector.load %arg1[%c0_1, %c0_2] : memref<8x128xf32, #tpu.memory_space<vmem>>, vector<8x128xf32>
    tpu.vector_store %arg1[%c0_1, %c0_2], %1 {strides = array<i32>} : memref<8x128xf32, #tpu.memory_space<vmem>>, vector<8x128xf32>,
    return
  }
}

</mosaic_0001>

<bundles_post_ra>
// kernel: tpu_custom_call.1
= control target key start
LH: loop header
LB: loop body
LE: loop exit
PB: predicated region body
PF: predicated region fallthrough
CT: control target
= control target key end

     0   :  { %6 = vsyncpa [#allocation3], 0  ;;  %s118_s0 = inlined_call_operand.hbm [shape: f32[8,128], index: 0, kind: input, shape index: {}]   ;;  %s119_s1 = inlined_call_operand.hbm [shape: f32[8,128], index: 1, kind: output, shape index: {}]  }
   0x1   :  { %7 = vsyncpa [#allocation4], 0  ;;  %s13_s8 = sshll.u32 %s118_s0, 4  ;;  %s99_s9 = smov [#allocation2]   ;;  %s14_s8 = int_to_ptr.hbm [resolvable:$true] %s13_s8 }
   0x2   :  { %s15_s10 = sshll.u32 %s99_s9, 4  ;;  %s16_s10 = int_to_ptr.vmem [resolvable:$true] %s15_s10 }
   0x3   :  { %18 = dma.hbm_to_vmem [thread:$0]  %s14_s8, 128, %s16_s10, [#allocation3]  }
   0x4   :  { %95 = dma.done.wait [#allocation3], 128  }
   0x5   :  { %96 = vsyncadd [#allocation3], 4294967168  ;;  %v23_v0 = vld [vmem:[#allocation2] sm:$0xff]  ;;  %s100_s11 = smov 1   ;;  %s101_s12 = smov [#allocation5]  }
   0x6   :  { %24 = vrot.lane.b32.xlu0 %v23_v0, %s100_s11  ;;  %s32_s13 = sshll.u32 %s101_s12, 4  ;;  %s34_s16 = sshll.u32 %s119_s1, 4  ;;  %s33_s13 = int_to_ptr.vmem [resolvable:$true] %s32_s13  ;;  %s35_s16 = int_to_ptr.hbm [resolvable:$true] %s34_s16 }
  0x78   :  { %v25_v1 = vpop.permute.xlu0 %24 }
  0x79   :  { %26 = vst [vmem:[#allocation5] sm:$0xff] %v25_v1 }
  0x7a   :  { %37 = dma.vmem_to_hbm [thread:$0]  %s33_s13, 128, %s35_s16, [#allocation4]  }
  0x7b   :  { %97 = dma.done.wait [#allocation4], 128  }
  0x7c   :  { %98 = vsyncadd [#allocation4], 4294967168 }
  0x7d   :  { %42 = vsyncpa [#allocation3], 1 }
  0x7e   :  { %43 = vsyncpa [#allocation4], 1 }

</bundles_post_ra>
